<compile_context>
chip_gen: v5e
topology: v5e:2x2
jax: 0.10.0
libtpu: 0.0.40
codegen_flags: <defaults>
</compile_context>

<pallas_src>
import jax
import jax.numpy as jnp
from jax.experimental import pallas as pl
from jax.experimental.pallas import tpu as pltpu


def _mean_std_kernel(x_ref, mean_ref, inv_std_ref, o_ref):
    # Elementwise hot path: (x - mean) * inv_std, broadcasting the (1, TD)
    # stats row over the (TB, TD) tile. Compute in f32 (native VPU on all
    # generations); cast back on store. Any out-of-bounds lanes of an edge
    # tile are discarded by the masked output store.
    x = x_ref[...].astype(jnp.float32)
    mean = mean_ref[...].astype(jnp.float32)
    inv_std = inv_std_ref[...].astype(jnp.float32)
    o_ref[...] = ((x - mean) * inv_std).astype(o_ref.dtype)


def _round_up(x, m):
    return ((x + m - 1) // m) * m


def mean_std_layer(x, mean, std, *, target_tile_bytes=4 * 1024 * 1024):
    """Pallas equivalent of Mean_std_layer.forward: y = (x - mean) / std.

    x:    (B, D)
    mean: (1, D)
    std:  (1, D)
    """
    B, D = x.shape
    assert mean.shape == (1, D) and std.shape == (1, D)
    out_dtype = x.dtype

    # Fixed trained statistics: compute the exact reciprocal once (O(D)) so
    # the per-element path has no divides (~1 ulp vs. the reference divide).
    inv_std = 1.0 / std.astype(jnp.float32)

    dtype_bytes = jnp.dtype(x.dtype).itemsize
    sublane = max(8, 32 // dtype_bytes)  # 8 f32, 16 bf16, 32 int8
    LANES = 128

    # --- Feature tile --------------------------------------------------------
    # Prefer TD == D (one contiguous HBM DMA per tile, stats grid-invariant).
    # Only tile the feature dim when D is 128-aligned AND even a sublane-high
    # strip of the full row would exceed the tile-byte budget. When D is not
    # 128-aligned, TD = D is the legal, pad-free choice (block dim == array
    # dim waives the (8,128) rule).
    if D % LANES == 0 and D * sublane * dtype_bytes > target_tile_bytes:
        TD = max(LANES,
                 (target_tile_bytes // (sublane * dtype_bytes)) // LANES * LANES)
        TD = min(TD, D)
    else:
        TD = D

    # --- Batch tile ----------------------------------------------------------
    rows = max(sublane, target_tile_bytes // (TD * dtype_bytes))
    rows = (rows // sublane) * sublane
    if B <= sublane or rows >= B:
        TB = B            # full batch in one block (always a legal block dim)
    else:
        TB = rows         # multiple of the sublane count -> legal, edge masked

    n_feat = pl.cdiv(D, TD)
    # Ensure at least 2 grid steps along a parallel axis whenever possible so
    # v7x can use both TensorCores; harmless on single-TC v5e/v6e.
    if n_feat * pl.cdiv(B, TB) < 2 and B > sublane:
        half = _round_up(pl.cdiv(B, 2), sublane)
        if half < B:
            TB = half
    n_batch = pl.cdiv(B, TB)

    # Batch innermost: the stats block index (0, j) is constant across
    # consecutive grid steps.
    grid = (n_feat, n_batch)

    out = pl.pallas_call(
        _mean_std_kernel,
        out_shape=jax.ShapeDtypeStruct((B, D), out_dtype),
        grid=grid,
        in_specs=[
            pl.BlockSpec((TB, TD), lambda j, i: (i, j)),   # x tile
            pl.BlockSpec((1, TD), lambda j, i: (0, j)),    # mean row (tiny)
            pl.BlockSpec((1, TD), lambda j, i: (0, j)),    # 1/std row (tiny)
        ],
        out_specs=pl.BlockSpec((TB, TD), lambda j, i: (i, j)),
        compiler_params=pltpu.CompilerParams(
            dimension_semantics=("parallel", "parallel"),
            # Double-buffered x + out at ~4 MiB tiles is ~16 MiB live; raise
            # the scoped-VMEM limit explicitly so v5e (16 MiB default) is fine
            # and v6e/v7x keep headroom (<= 64 MiB physical on v7x).
            vmem_limit_bytes=48 * 1024 * 1024,
        ),
    )(x, mean, inv_std)
    return out


if __name__ == "__main__":
    key = jax.random.PRNGKey(0)

    def run_case(batch, input_size):
        kx, km, ks = jax.random.split(
            jax.random.fold_in(key, batch * 1000 + input_size), 3)
        x = jax.random.normal(kx, (batch, input_size), dtype=jnp.float32)
        # Deterministic "trained statistics": arbitrary mean, positive std.
        mean = jax.random.normal(km, (1, input_size), dtype=jnp.float32)
        std = jax.random.uniform(ks, (1, input_size), dtype=jnp.float32,
                                 minval=0.5, maxval=1.5)
        y = jax.block_until_ready(mean_std_layer(x, mean, std))
        y_ref = (x - mean) / std
        assert y.shape == (batch, input_size)
        assert jnp.allclose(y, y_ref, atol=1e-5, rtol=1e-5), (batch, input_size)

    # Small shape consistent with the module's forward.
    run_case(8, 32)
    # Edge cases: non-(8,128)-aligned batch/feature dims (masked edge tiles,
    # full-extent feature block) and a 128-aligned feature dim.
    run_case(37, 200)
    run_case(20, 256)

    print("KERNEL_OK")
</pallas_src>

<mosaic_0001>
module attributes {stable_mosaic.version = 11 : i64} {
  func.func @_mean_std_kernel(%arg0: i32, %arg1: i32, %arg2: memref<8x32xf32, #tpu.memory_space<vmem>>, %arg3: memref<1x32xf32, #tpu.memory_space<vmem>>, %arg4: memref<1x32xf32, #tpu.memory_space<vmem>>, %arg5: memref<8x32xf32, #tpu.memory_space<vmem>>) attributes {dimension_semantics = [#tpu.dimension_semantics<parallel>, #tpu.dimension_semantics<parallel>], iteration_bounds = array<i64: 1, 1>, scalar_prefetch = 0 : i64, scratch_operands = 0 : i64, tpu.core_type = #tpu.core_type<tc>, window_params = [{transform_indices = @transform_0, window_bounds = array<i64: 8, 32>}, {transform_indices = @transform_1, window_bounds = array<i64: 1, 32>}, {transform_indices = @transform_2, window_bounds = array<i64: 1, 32>}, {transform_indices = @transform_3, window_bounds = array<i64: 8, 32>}]} {
    %c0 = arith.constant 0 : index
    %c0_0 = arith.constant 0 : index
    %0 = vector.load %arg2[%c0, %c0_0] : memref<8x32xf32, #tpu.memory_space<vmem>>, vector<8x32xf32>
    %c0_1 = arith.constant 0 : index
    %c0_2 = arith.constant 0 : index
    %1 = vector.load %arg3[%c0_1, %c0_2] : memref<1x32xf32, #tpu.memory_space<vmem>>, vector<1x32xf32>
    %c0_3 = arith.constant 0 : index
    %c0_4 = arith.constant 0 : index
    %2 = vector.load %arg4[%c0_3, %c0_4] : memref<1x32xf32, #tpu.memory_space<vmem>>, vector<1x32xf32>
    %3 = vector.broadcast %1 : vector<1x32xf32> to vector<8x32xf32>
    %4 = arith.subf %0, %3 : vector<8x32xf32>
    %5 = vector.broadcast %2 : vector<1x32xf32> to vector<8x32xf32>
    %6 = arith.mulf %4, %5 : vector<8x32xf32>
    %c0_5 = arith.constant 0 : index
    %c0_6 = arith.constant 0 : index
    %7 = vector.load %arg5[%c0_5, %c0_6] : memref<8x32xf32, #tpu.memory_space<vmem>>, vector<8x32xf32>
    tpu.vector_store %arg5[%c0_5, %c0_6], %6 {strides = array<i32>} : memref<8x32xf32, #tpu.memory_space<vmem>>, vector<8x32xf32>,
    return
  }
  func.func @transform_0(%arg0: i32, %arg1: i32) -> (i32, i32) {
    %c0_i32 = arith.constant 0 : i32
    return %arg1, %arg0 : i32, i32
  }
  func.func @transform_1(%arg0: i32, %arg1: i32) -> (i32, i32) {
    %c0_i32 = arith.constant 0 : i32
    %c0_i32_0 = arith.constant 0 : i32
    return %c0_i32, %arg0 : i32, i32
  }
  func.func @transform_2(%arg0: i32, %arg1: i32) -> (i32, i32) {
    %c0_i32 = arith.constant 0 : i32
    %c0_i32_0 = arith.constant 0 : i32
    return %c0_i32, %arg0 : i32, i32
  }
  func.func @transform_3(%arg0: i32, %arg1: i32) -> (i32, i32) {
    %c0_i32 = arith.constant 0 : i32
    return %arg1, %arg0 : i32, i32
  }
}

</mosaic_0001>

<bundles_post_ra>
// kernel: tpu_custom_call.1
= control target key start
LH: loop header
LB: loop body
LE: loop exit
PB: predicated region body
PF: predicated region fallthrough
CT: control target
= control target key end

     0   :  { %8 = vsyncpa [#allocation3], 0  ;;  %s192_s0 = inlined_call_operand.hbm [shape: f32[8,32], index: 0, kind: input, shape index: {}]   ;;  %s193_s1 = inlined_call_operand.hbm [shape: f32[1,32], index: 1, kind: input, shape index: {}]   ;;  %s194_s2 = inlined_call_operand.vmem [shape: f32[1,32], index: 2, kind: input, shape index: {}]   ;;  %s195_s3 = inlined_call_operand.hbm [shape: f32[8,32], index: 3, kind: output, shape index: {}]  }
   0x1   :  { %9 = vsyncpa [#allocation6], 0 }
   0x2   :  { %10 = vsyncpa [#allocation4], 0  ;;  %s16_s14 = sshll.u32 %s192_s0, 4  ;;  %s157_s15 = smov [#allocation2]   ;;  %s17_s14 = int_to_ptr.hbm [resolvable:$true] %s16_s14 }
   0x3   :  { %s18_s16 = sshll.u32 %s157_s15, 4  ;;  %s27_s19 = sshll.u32 %s193_s1, 4  ;;  %s19_s16 = int_to_ptr.vmem [resolvable:$true] %s18_s16  ;;  %s28_s19 = int_to_ptr.hbm [resolvable:$true] %s27_s19 }
   0x4   :  { %21 = dma.hbm_to_vmem [thread:$0]  %s17_s14, 128, %s19_s16, [#allocation3]  }
   0x5   :  { %s158_s20 = smov [#allocation5]  }
   0x6   :  { %s29_s21 = sshll.u32 %s158_s20, 4  ;;  %s30_s21 = int_to_ptr.vmem [resolvable:$true] %s29_s21 }
   0x7   :  { %32 = dma.hbm_to_vmem [thread:$0]  %s28_s19, 16, %s30_s21, [#allocation6]  }
   0x8   :  { %151 = dma.done.wait [#allocation3], 128  }
   0x9   :  { %152 = vsyncadd [#allocation3], 4294967168 }
   0xa   :  { %153 = dma.done.wait [#allocation6], 16  }
   0xb   :  { %154 = vsyncadd [#allocation6], 4294967280  ;;  %v43_v0 = vld [vmem:[#allocation2] sm:$0xff]  ;;  %v77_v1 = vld [vmem:[#allocation5] ss:$0 sm:$0xff]  ;;  %s159_s23 = smov [#allocation7]  }
   0xc   :  { %v78_v2 = vld [vmem:[%s194_s2] ss:$0 sm:$0xff]  ;;  %s61_s24 = sshll.u32 %s159_s23, 4  ;;  %s63_s26 = sshll.u32 %s195_s3, 4  ;;  %v49_v3 = vsub.f32 %v43_v0, %v77_v1  ;;  %vm54_vm0 = vcmask 261120   ;;  %s62_s24 = int_to_ptr.vmem [resolvable:$true] %s61_s24  ;;  %s64_s26 = int_to_ptr.hbm [resolvable:$true] %s63_s26 }
   0xe   :  { %v53_v4 = vmul.f32 %v78_v2, %v49_v3 }
  0x10   :  { %55 = vst.msk [vmem:[#allocation7] sm:$0xff] %vm54_vm0, %v53_v4 }
  0x11   :  { %66 = dma.vmem_to_hbm [thread:$0]  %s62_s24, 128, %s64_s26, [#allocation4]  }
  0x12   :  { %155 = dma.done.wait [#allocation4], 128  }
  0x13   :  { %156 = vsyncadd [#allocation4], 4294967168 }
  0x14   :  { %71 = vsyncpa [#allocation3], 1 }
  0x15   :  { %72 = vsyncpa [#allocation6], 1 }
  0x16   :  { %73 = vsyncpa [#allocation4], 1 }

</bundles_post_ra>
